<compile_context>
chip_gen: v7x
topology: tpu7x:2x2x1
jax: 0.10.0
libtpu: 0.0.40
codegen_flags: <defaults>
</compile_context>

<pallas_src>
import functools

import jax
import jax.numpy as jnp
from jax import lax
from jax.experimental import pallas as pl
from jax.experimental.pallas import tpu as pltpu

LANE = 128
VMEM_LIMIT = 32 * 1024 * 1024  # explicit scoped-VMEM budget, safe on v5e/v6e/v7x


def _pick_tile(n_pad, cap):
    """Largest multiple of 128 <= cap that divides n_pad (n_pad % 128 == 0)."""
    t = min(cap, n_pad)
    while n_pad % t:
        t -= LANE
    return t


# ----------------------------------------------------------------------------
# Kernel 1: fused Q/K/V 1x1-conv projections
#   q = Wq x_q + bq  (Wq, bq pre-scaled by 1/sqrt(head_dim), head-major rows)
#   k = Wk x_k + bk ; v = Wv x_v + bv
# ----------------------------------------------------------------------------
def _qkv_proj_kernel(w_ref, b_ref, xq_ref, xk_ref, xv_ref, o_ref):
    xq = xq_ref[...].astype(jnp.bfloat16)
    xk = xk_ref[...].astype(jnp.bfloat16)
    xv = xv_ref[...].astype(jnp.bfloat16)
    o_ref[0] = (jnp.dot(w_ref[0], xq, preferred_element_type=jnp.float32)
                + b_ref[0]).astype(o_ref.dtype)
    o_ref[1] = (jnp.dot(w_ref[1], xk, preferred_element_type=jnp.float32)
                + b_ref[1]).astype(o_ref.dtype)
    o_ref[2] = (jnp.dot(w_ref[2], xv, preferred_element_type=jnp.float32)
                + b_ref[2]).astype(o_ref.dtype)


def _qkv_proj_shared_kernel(w_ref, b_ref, xq_ref, xkv_ref, o_ref):
    # key is value (SuperGlue call pattern): read the shared source once,
    # dropping ~1/3 of this HBM-bound kernel's input bytes.
    xq = xq_ref[...].astype(jnp.bfloat16)
    xkv = xkv_ref[...].astype(jnp.bfloat16)
    o_ref[0] = (jnp.dot(w_ref[0], xq, preferred_element_type=jnp.float32)
                + b_ref[0]).astype(o_ref.dtype)
    o_ref[1] = (jnp.dot(w_ref[1], xkv, preferred_element_type=jnp.float32)
                + b_ref[1]).astype(o_ref.dtype)
    o_ref[2] = (jnp.dot(w_ref[2], xkv, preferred_element_type=jnp.float32)
                + b_ref[2]).astype(o_ref.dtype)


def qkv_project(w_qkv, b_qkv, xq, xk, xv):
    """w_qkv: (3, D, D) bf16 (head-major rows, Q pre-scaled); b_qkv: (3, D, 1)
    f32; x*: (B, D, n_pad) f32.  Returns (B, 3, D, n_pad) bf16."""
    batch, d_model, n_pad = xq.shape
    tn = _pick_tile(n_pad, 512)
    x_spec = pl.BlockSpec((None, d_model, tn), lambda bb, t: (bb, 0, t))
    w_spec = pl.BlockSpec((3, d_model, d_model), lambda bb, t: (0, 0, 0))
    b_spec = pl.BlockSpec((3, d_model, 1), lambda bb, t: (0, 0, 0))

    share_kv = xk is xv
    if share_kv:
        kernel = _qkv_proj_shared_kernel
        operands = (w_qkv, b_qkv, xq, xk)
        in_specs = [w_spec, b_spec, x_spec, x_spec]
    else:
        kernel = _qkv_proj_kernel
        operands = (w_qkv, b_qkv, xq, xk, xv)
        in_specs = [w_spec, b_spec, x_spec, x_spec, x_spec]

    return pl.pallas_call(
        kernel,
        out_shape=jax.ShapeDtypeStruct((batch, 3, d_model, n_pad), jnp.bfloat16),
        grid=(batch, n_pad // tn),
        in_specs=in_specs,
        out_specs=pl.BlockSpec((None, 3, d_model, tn),
                               lambda bb, t: (bb, 0, 0, t)),
        compiler_params=pltpu.CompilerParams(
            dimension_semantics=("parallel", "parallel"),
            vmem_limit_bytes=VMEM_LIMIT),
    )(*operands)


# ----------------------------------------------------------------------------
# Kernel 2: flash-style attention + merge conv
#   grid (batch, q_tile, head, kv_tile); running softmax over kv; per-head
#   outputs staged in VMEM; one (D, D) merge matmul and one store per
#   (batch, q_tile) output block.
# ----------------------------------------------------------------------------
def _attn_merge_kernel(q_ref, k_ref, v_ref, wm_ref, bm_ref, o_ref,
                       m_sc, l_sc, acc_sc, stage_sc,
                       *, n_valid, n_padded, head_dim):
    h = pl.program_id(2)
    kv = pl.program_id(3)
    last_h = pl.num_programs(2) - 1
    last_kv = pl.num_programs(3) - 1

    # Running-softmax state, re-initialised for every (batch, q_tile, head).
    @pl.when(kv == 0)
    def _init_head():
        m_sc[...] = jnp.full_like(m_sc, -jnp.inf)
        l_sc[...] = jnp.zeros_like(l_sc)
        acc_sc[...] = jnp.zeros_like(acc_sc)

    q = q_ref[...]                          # (head_dim, tq)  bf16, pre-scaled
    k = k_ref[...]                          # (head_dim, tkv) bf16
    v = v_ref[...]                          # (head_dim, tkv) bf16

    # s[kv_pos, q_pos] = sum_d k[d, kv_pos] * q[d, q_pos]
    # TODO(synk): inspect pl.lower_as_mlir for a per-step relayout of `k`
    # (contraction on dim 0 of both operands); if present, emit K
    # position-major from kernel 1 instead.
    s = lax.dot_general(k, q, (((0,), (0,)), ((), ())),
                        preferred_element_type=jnp.float32)      # (tkv, tq)

    if n_valid < n_padded:
        # Mask padded KEY positions.  Safe because padding < 128 <= tkv, so
        # the first kv tile always contains valid keys (no fully-masked tile).
        tkv = k.shape[1]
        kv_pos = kv * tkv + lax.broadcasted_iota(jnp.int32, (tkv, 1), 0)
        s = jnp.where(kv_pos < n_valid, s, -1e30)

    m_prev = m_sc[...]                                           # (1, tq) f32
    m_new = jnp.maximum(m_prev, jnp.max(s, axis=0, keepdims=True))
    alpha = jnp.exp(m_prev - m_new)                              # (1, tq) f32
    # bf16 exponentials: the EUP (exp) binds before the MXU at head_dim<=64;
    # bf16 roughly halves the EUP work on v6e/v7x (p is needed in bf16 for the
    # PV matmul anyway).  Bookkeeping (m, l, alpha) stays in f32.
    p = jnp.exp((s - m_new).astype(jnp.bfloat16))                # (tkv, tq) bf16
    l_sc[...] = alpha * l_sc[...] + jnp.sum(
        p.astype(jnp.float32), axis=0, keepdims=True)
    acc_sc[...] = alpha * acc_sc[...] + jnp.dot(
        v, p, preferred_element_type=jnp.float32)                # (head_dim, tq)
    m_sc[...] = m_new

    # End of this head's kv loop: stage the normalised head output (bf16) into
    # the head-major staging buffer (aligned sublane slab, outside the kv loop).
    @pl.when(kv == last_kv)
    def _stage_head():
        inv_l = pl.reciprocal(l_sc[...], approx=True)            # (1, tq)
        row0 = pl.multiple_of(h * head_dim, head_dim)
        stage_sc[pl.ds(row0, head_dim), :] = (
            acc_sc[...] * inv_l).astype(jnp.bfloat16)

    # All heads done: one K=d_model merge matmul + bias, single output store.
    @pl.when((h == last_h) & (kv == last_kv))
    def _merge():
        merged = jnp.dot(wm_ref[...], stage_sc[...],
                         preferred_element_type=jnp.float32) + bm_ref[...]
        o_ref[...] = merged.astype(o_ref.dtype)


def attention_merge(qkv, wm_full, bm, *, num_heads, n_valid, out_dtype):
    """qkv: (B, 3, D, n_pad) bf16 head-major; wm_full: (D, D) bf16 with
    head-major input columns; bm: (D, 1) f32.  Returns (B, D, n_pad)."""
    batch, _, d_model, n_pad = qkv.shape
    head_dim = d_model // num_heads
    tq = _pick_tile(n_pad, 512)     # bounds vreg/VMEM pressure independent of n
    tkv = _pick_tile(n_pad, 256)
    kern = functools.partial(_attn_merge_kernel, n_valid=n_valid,
                             n_padded=n_pad, head_dim=head_dim)
    return pl.pallas_call(
        kern,
        out_shape=jax.ShapeDtypeStruct((batch, d_model, n_pad), out_dtype),
        grid=(batch, n_pad // tq, num_heads, n_pad // tkv),
        in_specs=[
            pl.BlockSpec((None, None, head_dim, tq),
                         lambda bb, qi, h, kv: (bb, 0, h, qi)),   # Q tile
            pl.BlockSpec((None, None, head_dim, tkv),
                         lambda bb, qi, h, kv: (bb, 1, h, kv)),   # K tile
            pl.BlockSpec((None, None, head_dim, tkv),
                         lambda bb, qi, h, kv: (bb, 2, h, kv)),   # V tile
            pl.BlockSpec((d_model, d_model),
                         lambda bb, qi, h, kv: (0, 0)),           # merge W (full)
            pl.BlockSpec((d_model, 1), lambda bb, qi, h, kv: (0, 0)),
        ],
        out_specs=pl.BlockSpec((None, d_model, tq),
                               lambda bb, qi, h, kv: (bb, 0, qi)),
        scratch_shapes=[
            pltpu.VMEM((1, tq), jnp.float32),            # running max
            pltpu.VMEM((1, tq), jnp.float32),            # running denom
            pltpu.VMEM((head_dim, tq), jnp.float32),     # running PV accum
            pltpu.VMEM((d_model, tq), jnp.bfloat16),     # per-head staging
        ],
        compiler_params=pltpu.CompilerParams(
            dimension_semantics=("parallel", "parallel",
                                 "arbitrary", "arbitrary"),
            vmem_limit_bytes=VMEM_LIMIT),
    )(qkv, qkv, qkv, wm_full, bm)


# ----------------------------------------------------------------------------
# Parameter packing: head-major permutation, QKV stacking, scale folding, bf16
# ----------------------------------------------------------------------------
def pack_params(params, num_heads):
    (wq, bq), (wk, bk), (wv, bv) = params["proj"]
    wm, bm = params["merge"]
    d_model = wq.shape[0]
    head_dim = d_model // num_heads
    # head-major: new channel h*head_dim + d  <-  old channel d*num_heads + h
    perm = jnp.arange(d_model).reshape(head_dim, num_heads).T.reshape(-1)
    scale = 1.0 / (head_dim ** 0.5)
    w_qkv = jnp.stack([wq[perm, :] * scale, wk[perm, :], wv[perm, :]]
                      ).astype(jnp.bfloat16)                        # (3, D, D)
    b_qkv = jnp.stack([bq[perm] * scale, bk[perm], bv[perm]]
                      ).reshape(3, d_model, 1).astype(jnp.float32)
    wm_full = wm[:, perm].astype(jnp.bfloat16)                      # (D, D)
    bm_col = bm.reshape(d_model, 1).astype(jnp.float32)
    return {"w_qkv": w_qkv, "b_qkv": b_qkv, "wm": wm_full, "bm": bm_col,
            "num_heads": num_heads}


# ----------------------------------------------------------------------------
# Module forward
# ----------------------------------------------------------------------------
def multi_headed_attention(packed, query, key, value):
    b, d_model, n = query.shape
    n_pad = ((n + LANE - 1) // LANE) * LANE
    share_kv = key is value
    if n_pad != n:
        padw = ((0, 0), (0, 0), (0, n_pad - n))
        query = jnp.pad(query, padw)
        key = jnp.pad(key, padw)
        value = key if share_kv else jnp.pad(value, padw)
    qkv = qkv_project(packed["w_qkv"], packed["b_qkv"], query, key, value)
    out = attention_merge(qkv, packed["wm"], packed["bm"],
                          num_heads=packed["num_heads"],
                          n_valid=n, out_dtype=query.dtype)
    return out[:, :, :n] if n_pad != n else out


# ----------------------------------------------------------------------------
# Deterministic parameter init (Conv1d k=1 -> (out, in) weight + bias)
# ----------------------------------------------------------------------------
def init_params(key, d_model):
    keys = jax.random.split(key, 8)
    bound = 1.0 / (d_model ** 0.5)

    def conv_init(kw, kb):
        w = jax.random.uniform(kw, (d_model, d_model), jnp.float32,
                               minval=-bound, maxval=bound)
        b = jax.random.uniform(kb, (d_model,), jnp.float32,
                               minval=-bound, maxval=bound)
        return w, b

    proj = [conv_init(keys[2 * i], keys[2 * i + 1]) for i in range(3)]
    merge = conv_init(keys[6], keys[7])
    return {"proj": proj, "merge": merge}


# ----------------------------------------------------------------------------
# Pure-JAX f32 reference (matches the PyTorch module)
# ----------------------------------------------------------------------------
def reference(params, query, key, value, num_heads):
    b, d_model, n = query.shape
    head_dim = d_model // num_heads

    def conv(x, w, bias):
        return jnp.einsum('oi,bin->bon', w, x) + bias[None, :, None]

    qp, kp, vp = [conv(x, w, bias).reshape(b, head_dim, num_heads, n)
                  for (w, bias), x in zip(params["proj"],
                                          (query, key, value))]
    scores = jnp.einsum('bdhn,bdhm->bhnm', qp, kp) / (head_dim ** 0.5)
    prob = jax.nn.softmax(scores, axis=-1)
    x = jnp.einsum('bhnm,bdhm->bdhn', prob, vp).reshape(b, d_model, n)
    w_m, b_m = params["merge"]
    return conv(x, w_m, b_m)


if __name__ == "__main__":
    batch, d_model, num_heads, n_points = 2, 64, 4, 16

    root = jax.random.PRNGKey(0)
    kp, kq, kk, kv = jax.random.split(root, 4)
    params = init_params(kp, d_model)
    packed = pack_params(params, num_heads)

    query = jax.random.normal(kq, (batch, d_model, n_points), jnp.float32)
    key_ = jax.random.normal(kk, (batch, d_model, n_points), jnp.float32)
    value = jax.random.normal(kv, (batch, d_model, n_points), jnp.float32)

    # General path: three distinct inputs.
    out = jax.block_until_ready(
        multi_headed_attention(packed, query, key_, value))
    ref = reference(params, query, key_, value, num_heads)
    assert out.shape == (batch, d_model, n_points)
    max_err = float(jnp.max(jnp.abs(out - ref)))
    # bf16 MXU operands, bf16 exp, approx reciprocal => looser tolerance.
    assert jnp.allclose(out, ref, atol=2e-2, rtol=2e-2), \
        f"mismatch vs reference, max abs err = {max_err}"

    # SuperGlue call pattern: key is value (exercises the shared-KV kernel).
    out_s = jax.block_until_ready(
        multi_headed_attention(packed, query, value, value))
    ref_s = reference(params, query, value, value, num_heads)
    max_err_s = float(jnp.max(jnp.abs(out_s - ref_s)))
    assert jnp.allclose(out_s, ref_s, atol=2e-2, rtol=2e-2), \
        f"shared-kv mismatch vs reference, max abs err = {max_err_s}"

    print("KERNEL_OK")
</pallas_src>

<mosaic_0001>
module attributes {stable_mosaic.version = 11 : i64} {
  func.func @_qkv_proj_kernel(%arg0: i32, %arg1: i32, %arg2: memref<3x64x64xbf16, #tpu.memory_space<vmem>>, %arg3: memref<3x64x1xf32, #tpu.memory_space<vmem>>, %arg4: memref<1x64x128xf32, #tpu.memory_space<vmem>>, %arg5: memref<1x64x128xf32, #tpu.memory_space<vmem>>, %arg6: memref<1x64x128xf32, #tpu.memory_space<vmem>>, %arg7: memref<1x3x64x128xbf16, #tpu.memory_space<vmem>>) attributes {dimension_semantics = [#tpu.dimension_semantics<parallel>, #tpu.dimension_semantics<parallel>], iteration_bounds = array<i64: 2, 1>, scalar_prefetch = 0 : i64, scratch_operands = 0 : i64, tpu.core_type = #tpu.core_type<tc>, window_params = [{pipeline_mode = #tpu.pipeline_mode<synchronous>, transform_indices = @transform_0, window_bounds = array<i64: 3, 64, 64>}, {pipeline_mode = #tpu.pipeline_mode<synchronous>, transform_indices = @transform_1, window_bounds = array<i64: 3, 64, 1>}, {transform_indices = @transform_2, window_bounds = array<i64: 1, 64, 128>}, {transform_indices = @transform_3, window_bounds = array<i64: 1, 64, 128>}, {transform_indices = @transform_4, window_bounds = array<i64: 1, 64, 128>}, {transform_indices = @transform_5, window_bounds = array<i64: 1, 3, 64, 128>}]} {
    %c0 = arith.constant 0 : index
    %c0_0 = arith.constant 0 : index
    %c0_1 = arith.constant 0 : index
    %0 = vector.load %arg4[%c0, %c0_0, %c0_1] : memref<1x64x128xf32, #tpu.memory_space<vmem>>, vector<1x64x128xf32>
    %1 = vector.shape_cast %0 : vector<1x64x128xf32> to vector<64x128xf32>
    %2 = arith.truncf %1 : vector<64x128xf32> to vector<64x128xbf16>
    %c0_2 = arith.constant 0 : index
    %c0_3 = arith.constant 0 : index
    %c0_4 = arith.constant 0 : index
    %3 = vector.load %arg5[%c0_2, %c0_3, %c0_4] : memref<1x64x128xf32, #tpu.memory_space<vmem>>, vector<1x64x128xf32>
    %4 = vector.shape_cast %3 : vector<1x64x128xf32> to vector<64x128xf32>
    %5 = arith.truncf %4 : vector<64x128xf32> to vector<64x128xbf16>
    %c0_5 = arith.constant 0 : index
    %c0_6 = arith.constant 0 : index
    %c0_7 = arith.constant 0 : index
    %6 = vector.load %arg6[%c0_5, %c0_6, %c0_7] : memref<1x64x128xf32, #tpu.memory_space<vmem>>, vector<1x64x128xf32>
    %7 = vector.shape_cast %6 : vector<1x64x128xf32> to vector<64x128xf32>
    %8 = arith.truncf %7 : vector<64x128xf32> to vector<64x128xbf16>
    %c0_8 = arith.constant 0 : index
    %c0_9 = arith.constant 0 : index
    %c0_10 = arith.constant 0 : index
    %9 = vector.load %arg2[%c0_8, %c0_9, %c0_10] : memref<3x64x64xbf16, #tpu.memory_space<vmem>>, vector<1x64x64xbf16>
    %10 = vector.shape_cast %9 : vector<1x64x64xbf16> to vector<64x64xbf16>
    %cst = arith.constant dense<0.000000e+00> : vector<64x128xf32>
    %11 = tpu.matmul %10, %2, %cst {dimension_numbers = #tpu.dot_dimension_numbers<[1], [0], [0], [1], [0, 0, 1, 1], [], []>} : vector<64x64xbf16>, vector<64x128xbf16>, vector<64x128xf32> -> vector<64x128xf32>
    %c0_11 = arith.constant 0 : index
    %c0_12 = arith.constant 0 : index
    %c0_13 = arith.constant 0 : index
    %12 = vector.load %arg3[%c0_11, %c0_12, %c0_13] : memref<3x64x1xf32, #tpu.memory_space<vmem>>, vector<1x64x1xf32>
    %13 = vector.shape_cast %12 : vector<1x64x1xf32> to vector<64x1xf32>
    %14 = vector.broadcast %13 : vector<64x1xf32> to vector<64x128xf32>
    %15 = arith.addf %11, %14 : vector<64x128xf32>
    %16 = arith.truncf %15 : vector<64x128xf32> to vector<64x128xbf16>
    %c0_14 = arith.constant 0 : index
    %c0_15 = arith.constant 0 : index
    %c0_16 = arith.constant 0 : index
    %c0_17 = arith.constant 0 : index
    %17 = vector.load %arg7[%c0_14, %c0_15, %c0_16, %c0_17] : memref<1x3x64x128xbf16, #tpu.memory_space<vmem>>, vector<1x1x64x128xbf16>
    %18 = vector.shape_cast %17 : vector<1x1x64x128xbf16> to vector<64x128xbf16>
    %19 = vector.shape_cast %16 : vector<64x128xbf16> to vector<1x1x64x128xbf16>
    tpu.vector_store %arg7[%c0_14, %c0_15, %c0_16, %c0_17], %19 {strides = array<i32>} : memref<1x3x64x128xbf16, #tpu.memory_space<vmem>>, vector<1x1x64x128xbf16>,
    %c1 = arith.constant 1 : index
    %c0_18 = arith.constant 0 : index
    %c0_19 = arith.constant 0 : index
    %20 = vector.load %arg2[%c1, %c0_18, %c0_19] : memref<3x64x64xbf16, #tpu.memory_space<vmem>>, vector<1x64x64xbf16>
    %21 = vector.shape_cast %20 : vector<1x64x64xbf16> to vector<64x64xbf16>
    %cst_20 = arith.constant dense<0.000000e+00> : vector<64x128xf32>
    %22 = tpu.matmul %21, %5, %cst_20 {dimension_numbers = #tpu.dot_dimension_numbers<[1], [0], [0], [1], [0, 0, 1, 1], [], []>} : vector<64x64xbf16>, vector<64x128xbf16>, vector<64x128xf32> -> vector<64x128xf32>
    %c1_21 = arith.constant 1 : index
    %c0_22 = arith.constant 0 : index
    %c0_23 = arith.constant 0 : index
    %23 = vector.load %arg3[%c1_21, %c0_22, %c0_23] : memref<3x64x1xf32, #tpu.memory_space<vmem>>, vector<1x64x1xf32>
    %24 = vector.shape_cast %23 : vector<1x64x1xf32> to vector<64x1xf32>
    %25 = vector.broadcast %24 : vector<64x1xf32> to vector<64x128xf32>
    %26 = arith.addf %22, %25 : vector<64x128xf32>
    %27 = arith.truncf %26 : vector<64x128xf32> to vector<64x128xbf16>
    %c0_24 = arith.constant 0 : index
    %c1_25 = arith.constant 1 : index
    %c0_26 = arith.constant 0 : index
    %c0_27 = arith.constant 0 : index
    %28 = vector.load %arg7[%c0_24, %c1_25, %c0_26, %c0_27] : memref<1x3x64x128xbf16, #tpu.memory_space<vmem>>, vector<1x1x64x128xbf16>
    %29 = vector.shape_cast %28 : vector<1x1x64x128xbf16> to vector<64x128xbf16>
    %30 = vector.shape_cast %27 : vector<64x128xbf16> to vector<1x1x64x128xbf16>
    tpu.vector_store %arg7[%c0_24, %c1_25, %c0_26, %c0_27], %30 {strides = array<i32>} : memref<1x3x64x128xbf16, #tpu.memory_space<vmem>>, vector<1x1x64x128xbf16>,
    %c2 = arith.constant 2 : index
    %c0_28 = arith.constant 0 : index
    %c0_29 = arith.constant 0 : index
    %31 = vector.load %arg2[%c2, %c0_28, %c0_29] : memref<3x64x64xbf16, #tpu.memory_space<vmem>>, vector<1x64x64xbf16>
    %32 = vector.shape_cast %31 : vector<1x64x64xbf16> to vector<64x64xbf16>
    %cst_30 = arith.constant dense<0.000000e+00> : vector<64x128xf32>
    %33 = tpu.matmul %32, %8, %cst_30 {dimension_numbers = #tpu.dot_dimension_numbers<[1], [0], [0], [1], [0, 0, 1, 1], [], []>} : vector<64x64xbf16>, vector<64x128xbf16>, vector<64x128xf32> -> vector<64x128xf32>
    %c2_31 = arith.constant 2 : index
    %c0_32 = arith.constant 0 : index
    %c0_33 = arith.constant 0 : index
    %34 = vector.load %arg3[%c2_31, %c0_32, %c0_33] : memref<3x64x1xf32, #tpu.memory_space<vmem>>, vector<1x64x1xf32>
    %35 = vector.shape_cast %34 : vector<1x64x1xf32> to vector<64x1xf32>
    %36 = vector.broadcast %35 : vector<64x1xf32> to vector<64x128xf32>
    %37 = arith.addf %33, %36 : vector<64x128xf32>
    %38 = arith.truncf %37 : vector<64x128xf32> to vector<64x128xbf16>
    %c0_34 = arith.constant 0 : index
    %c2_35 = arith.constant 2 : index
    %c0_36 = arith.constant 0 : index
    %c0_37 = arith.constant 0 : index
    %39 = vector.load %arg7[%c0_34, %c2_35, %c0_36, %c0_37] : memref<1x3x64x128xbf16, #tpu.memory_space<vmem>>, vector<1x1x64x128xbf16>
    %40 = vector.shape_cast %39 : vector<1x1x64x128xbf16> to vector<64x128xbf16>
    %41 = vector.shape_cast %38 : vector<64x128xbf16> to vector<1x1x64x128xbf16>
    tpu.vector_store %arg7[%c0_34, %c2_35, %c0_36, %c0_37], %41 {strides = array<i32>} : memref<1x3x64x128xbf16, #tpu.memory_space<vmem>>, vector<1x1x64x128xbf16>,
    return
  }
  func.func @transform_0(%arg0: i32, %arg1: i32) -> (i32, i32, i32) {
    %c0_i32 = arith.constant 0 : i32
    %c0_i32_0 = arith.constant 0 : i32
    %c0_i32_1 = arith.constant 0 : i32
    %c0_i32_2 = arith.constant 0 : i32
    return %c0_i32, %c0_i32_0, %c0_i32_1 : i32, i32, i32
  }
  func.func @transform_1(%arg0: i32, %arg1: i32) -> (i32, i32, i32) {
    %c0_i32 = arith.constant 0 : i32
    %c0_i32_0 = arith.constant 0 : i32
    %c0_i32_1 = arith.constant 0 : i32
    %c0_i32_2 = arith.constant 0 : i32
    return %c0_i32, %c0_i32_0, %c0_i32_1 : i32, i32, i32
  }
  func.func @transform_2(%arg0: i32, %arg1: i32) -> (i32, i32, i32) {
    %c0_i32 = arith.constant 0 : i32
    %c0_i32_0 = arith.constant 0 : i32
    return %arg0, %c0_i32, %arg1 : i32, i32, i32
  }
  func.func @transform_3(%arg0: i32, %arg1: i32) -> (i32, i32, i32) {
    %c0_i32 = arith.constant 0 : i32
    %c0_i32_0 = arith.constant 0 : i32
    return %arg0, %c0_i32, %arg1 : i32, i32, i32
  }
  func.func @transform_4(%arg0: i32, %arg1: i32) -> (i32, i32, i32) {
    %c0_i32 = arith.constant 0 : i32
    %c0_i32_0 = arith.constant 0 : i32
    return %arg0, %c0_i32, %arg1 : i32, i32, i32
  }
  func.func @transform_5(%arg0: i32, %arg1: i32) -> (i32, i32, i32, i32) {
    %c0_i32 = arith.constant 0 : i32
    %c0_i32_0 = arith.constant 0 : i32
    %c0_i32_1 = arith.constant 0 : i32
    return %arg0, %c0_i32, %c0_i32_0, %arg1 : i32, i32, i32, i32
  }
}

</mosaic_0001>

<bundles_post_ra>
// kernel: tpu_custom_call.1
= control target key start
LH: loop header
LB: loop body
LE: loop exit
PB: predicated region body
PF: predicated region fallthrough
CT: control target
= control target key end

     0   :  { %10 = vsyncpa [#allocation3], 0  ;;  %s2124_s0 = inlined_call_operand.hbm [shape: bf16[3,64,64], index: 0, kind: input, shape index: {}]   ;;  %s2125_s1 = inlined_call_operand.vmem [shape: f32[3,64,1], index: 1, kind: input, shape index: {}]   ;;  %s2126_s2 = inlined_call_operand.vmem [shape: f32[2,64,128], index: 2, kind: input, shape index: {}]   ;;  %s2127_s3 = inlined_call_operand.hbm [shape: f32[2,64,128], index: 3, kind: input, shape index: {}]   ;;  %s2128_s4 = inlined_call_operand.hbm [shape: f32[2,64,128], index: 4, kind: input, shape index: {}]   ;;  %s2129_s5 = inlined_call_operand.hbm [shape: bf16[2,3,64,128], index: 5, kind: output, shape index: {}]  }
   0x1   :  { %11 = vsyncpa [#allocation6], 0 }
   0x2   :  { %13 = vsyncpa [#allocation6 + $0x1], 0 }
   0x3   :  { %14 = vsyncpa [#allocation4], 0 }
   0x4   :  { %16 = vsyncpa [#allocation4 + $0x1], 0  ;;  %s1717_s18 = smov 0   ;;  %s1719_s19 = smov 0  }
   0x5   :  { %s1721_s20 = smov 0   ;;  %s1723_s21 = smov 0  }
   0x6   :  { %s1725_s22 = smov 0   ;;  %s1727_s23 = smov 0  }
   0x7 LB: > { %s34_s24 = sadd.s32 1, %s1670_s22  ;;  %s113_s25 = sadd.s32 1, %s1662_s20  ;;  %s1674_s23 = sphi %s1727_s23, %s22_s23   ;;  %s1670_s22 = sphi %s1725_s22, %s2157_s22   ;;  %s1666_s21 = sphi %s1723_s21, %s2156_s21   ;;  %s1662_s20 = sphi %s1721_s20, %s2155_s20   ;;  %s1658_s19 = sphi %s1719_s19, %s2154_s19   ;;  %s1654_s18 = sphi %s1717_s18, %s2153_s18  }
   0x8   : > { %p36_p0 = scmp.ge.s32.totalorder %s34_s24, 2  ;;  %p120_p1 = scmp.ne.s32.totalorder %s1662_s20, %s1658_s19 }
   0x9   : > { %p121_p2 = scmp.eq.s32.totalorder %s1674_s23, 0  ;;  %p1427_p5 = scmp.lt.s32.totalorder %s1674_s23, 2 }
   0xa   : > { %s2159_s24 = smov (%p36_p0, %s34_s24), 0  ;;  %s233_s27 = sand.u32 1, %s1674_s23  }
   0xb   : > { %p122_p4 = por %p121_p2, %p120_p1  ;;  %s108_s26 = ssub.s32 %s1670_s22, %s2159_s24 }
   0xc   : > { %p111_p6 = scmp.eq.s32.totalorder %s108_s26, 0  ;;  %s235_s28 = sand.u32 1, %s1662_s20  }
   0xd   : > { %s1221_s29 = sshll.u32 %s1670_s22, 10  ;;  %s1767_s6 = sshll.u32 %s235_s28, 6 }
   0xe   : > { %s1765_s30 = scalar_select %p111_p6, %s1662_s20, %s113_s25  }
   0xf   : > { %s1774_s9 = scalar_lea.hbm %s2127_s3, %s1221_s29  ;;  %p1776_p7 = pnand %p1427_p5, %p122_p4 }
  0x10   : > { %s237_s11 = scalar_lea.vmem [#allocation5], %s1767_s6  ;;  %s1783_s13 = scalar_lea.sflag [#allocation6], %s233_s27 }
  0x11   : > { %s245_s12 = sshll.u32 %s237_s11, 4  ;;  %s1500_s14 = scalar_lea.hbm %s1774_s9, 1024  ;;  %s1781_s12 = int_to_ptr.vmem [resolvable:$true] %s245_s12 }
  0x12   : > { %p1501_p8 = scmp.ne.s32.totalorder %s1774_s9, %s1500_s14  ;;  %p1502_p9 = pneg %p1776_p7 }
  0x13   : > { %s1505_s17 = scalar_lea.hbm %s2127_s3, 2048  ;;  %p1506_p12 = scmp.lt.u32.totalorder %s1774_s9, %s2127_s3 }
  0x14   : > { %p1503_p10 = pnand %p1502_p9, %p1501_p8  ;;  %p1507_p13 = scmp.lt.u32.totalorder %s1505_s17, %s1500_s14 }
  0x15   : > { %p1509_p2 = scmp.lt.u32.totalorder %s1500_s14, %s1774_s9 }
  0x16   : > { %p1504_p11 = pneg %p1503_p10  ;;  %p1508_p0 = por %p1507_p13, %p1506_p12 }
  0x18   : > { %p1510_p4 = por %p1509_p2, %p1508_p0 }
  0x1a   : > { %p1511_p5 = pnand %p1510_p4, %p1504_p11 }
  0x1c   : > { %1514 = shalt.err (!%p1511_p5)
}
  0x1d   : > { %s1515_s27 = scalar_lea.vmem %s1781_s12, 1024  ;;  %s1676_s28 = smov [#allocation5]  }
  0x1e   : > { %p1516_p6 = scmp.ne.s32.totalorder %s1781_s12, %s1515_s27  ;;  %s1520_s7 = sshll.u32 %s1676_s28, 4  ;;  %s1521_s7 = int_to_ptr.vmem [resolvable:$false] %s1520_s7 }
  0x1f   : > { %s1522_s8 = scalar_lea.vmem %s1521_s7, 2048  ;;  %p1523_p3 = scmp.lt.s32.totalorder %s1781_s12, %s1521_s7 }
  0x20   : > { %p1518_p8 = pnand %p1516_p6, %p1502_p9  ;;  %p1524_p12 = scmp.lt.s32.totalorder %s1522_s8, %s1515_s27 }
  0x22   : > { %p1519_p10 = pneg %p1518_p8  ;;  %p1525_p13 = por %p1524_p12, %p1523_p3 }
  0x24   : > { %p1526_p0 = pnand %p1525_p13, %p1519_p10 }
  0x26   : > { %1529 = shalt.err (!%p1526_p0)
}
  0x27   : > { %s2130_s11 = smov 128   ;;  %s2131_s14 = smov 8  }
  0x28   : > { %1418 = dma.hbm_to_vmem [thread:$0]  (!%p1776_p7), %s1774_s9, 1024, %s1781_s12, %s1783_s13, %s2130_s11, %s2130_s11, %s2131_s14  }
  0x29   : > { %s1819_s17 = scalar_lea.hbm %s2128_s4, %s1221_s29  ;;  %s259_s25 = scalar_lea.vmem [#allocation7], %s1767_s6 }
  0x2a   : > { %s267_s26 = sshll.u32 %s259_s25, 4  ;;  %s1825_s27 = sadd.s32 4294967295, %s1674_s23   ;;  %s1822_s26 = int_to_ptr.vmem [resolvable:$true] %s267_s26 }
  0x2b   : > { %s1122_s28 = sadd.s32 4294967294, %s1674_s23   ;;  %p126_p3 = scmp.ne.s32.totalorder %s1658_s19, %s1654_s18 }
  0x2c   : > { %p2132_p11 = scmp.eq.s32.totalorder %s1825_s27, 0  ;;  %p180_p2 = scmp.eq.s32.totalorder %s1825_s27, 1 }
  0x2d   : > { %p186_p4 = scmp.eq.s32.totalorder %s1122_s28, 1  ;;  %p1123_p5 = scmp.ge.s32.totalorder %s1674_s23, 1 }
  0x2e   : > { %p1835_p6 = por %p2132_p11, %p126_p3  ;;  %p1842_p8 = por %p180_p2, %p120_p1 }
  0x2f   : > { %p1846_p10 = por %p186_p4, %p126_p3  ;;  %p193_p12 = scmp.lt.s32.totalorder %s1674_s23, 3 }
  0x30   : > { %s2137_s29 = scalar_select %p1835_p6, 1, 0 }
  0x31   : > { %s2138_s6 = scalar_select %p1842_p8, 1, 0 }
  0x32   : > { %s2139_s9 = scalar_select %p1846_p10, 1, 0 }
  0x33   : > { %p1851_p13 = pnand %p1123_p5, %p193_p12  ;;  %s1679_s7 = smov [#allocation2]  }
  0x34   : > { %s205_s8 = sshll.u32 %s1679_s7, 4  ;;  %s1530_s15 = scalar_lea.hbm %s1819_s17, 1024  ;;  %s1855_s8 = int_to_ptr.vmem [resolvable:$true] %s205_s8 }
  0x35   : > { %s2140_s12 = scalar_select %p1851_p13, 1, 0 }
  0x36   : > { %p1531_p0 = scmp.ne.s32.totalorder %s1819_s17, %s1530_s15  ;;  %s1535_s28 = scalar_lea.hbm %s2128_s4, 2048 }
  0x37   : > { %p1536_p4 = scmp.lt.u32.totalorder %s1819_s17, %s2128_s4  ;;  %p1537_p5 = scmp.lt.u32.totalorder %s1535_s28, %s1530_s15 }
  0x38   : > { %p1533_p3 = pnand %p1531_p0, %p1502_p9  ;;  %p1539_p11 = scmp.lt.u32.totalorder %s1530_s15, %s1819_s17 }
  0x39   : > { %p1538_p12 = por %p1537_p5, %p1536_p4 }
  0x3a   : > { %p1534_p2 = pneg %p1533_p3 }
  0x3b   : > { %p1540_p10 = por %p1539_p11, %p1538_p12 }
  0x3d   : > { %p1541_p8 = pnand %p1540_p10, %p1534_p2 }
  0x3f   : > { %1544 = shalt.err (!%p1541_p8)
}
  0x40   : > { %s1545_s7 = scalar_lea.vmem %s1822_s26, 1024  ;;  %s1680_s16 = smov [#allocation7]  }
  0x41   : > { %p1546_p0 = scmp.ne.s32.totalorder %s1822_s26, %s1545_s7  ;;  %s1550_s25 = sshll.u32 %s1680_s16, 4  ;;  %s1551_s25 = int_to_ptr.vmem [resolvable:$false] %s1550_s25 }
  0x42   : > { %s1552_s11 = scalar_lea.vmem %s1551_s25, 2048  ;;  %p1553_p6 = scmp.lt.s32.totalorder %s1822_s26, %s1551_s25 }
  0x43   : > { %p1548_p3 = pnand %p1546_p0, %p1502_p9  ;;  %p1554_p4 = scmp.lt.s32.totalorder %s1552_s11, %s1545_s7 }
  0x45   : > { %p1549_p1 = pneg %p1548_p3  ;;  %p1555_p5 = por %p1554_p4, %p1553_p6 }
  0x47   : > { %p1556_p11 = pnand %p1555_p5, %p1549_p1 }
  0x49   : > { %1559 = shalt.err (!%p1556_p11)
}
  0x4a   : > { %s2141_s14 = smov 8   ;;  %s2142_s15 = smov 128  }
  0x4b   : > { %1421 = dma.hbm_to_vmem [thread:$0]  (!%p1776_p7), %s1819_s17, 1024, %s1822_s26, %s1783_s13, %s2142_s15, %s2142_s15, %s2141_s14  }
  0x4c   : > { %p2143_p9 = scmp.eq.s32.totalorder %s1825_s27, 0  ;;  %p2144_p8 = pneg %p1851_p13 }
  0x4d   : > { %s1560_s10 = scalar_lea.hbm %s2124_s0, 1536 }
  0x4e   : > { %p1891_p10 = pnand %p2144_p8, %p2143_p9  ;;  %p1561_p6 = scmp.ne.s32.totalorder %s2124_s0, %s1560_s10 }
  0x4f   : > { %p1567_p12 = scmp.lt.u32.totalorder %s1560_s10, %s2124_s0 }
  0x50   : > { %p1562_p1 = pneg %p1891_p10 }
  0x52   : > { %p1563_p2 = pnand %p1562_p1, %p1561_p6 }
  0x54   : > { %p1564_p7 = pneg %p1563_p2 }
  0x56   : > { %p1569_p0 = pnand %p1567_p12, %p1564_p7 }
  0x58   : > { %1572 = shalt.err (!%p1569_p0)
}
  0x59   : > { %s1573_s26 = scalar_lea.vmem %s1855_s8, 1536  ;;  %p1581_p11 = scmp.lt.s32.totalorder %s1855_s8, %s1855_s8 }
  0x5a   : > { %p1574_p3 = scmp.ne.s32.totalorder %s1855_s8, %s1573_s26  ;;  %p1582_p9 = scmp.lt.s32.totalorder %s1573_s26, %s1573_s26 }
  0x5c   : > { %p1576_p4 = pnand %p1574_p3, %p1562_p1  ;;  %p1583_p8 = por %p1582_p9, %p1581_p11 }
  0x5e   : > { %p1577_p5 = pneg %p1576_p4 }
  0x60   : > { %p1584_p13 = pnand %p1583_p8, %p1577_p5 }
  0x62   : > { %1587 = shalt.err (!%p1584_p13)
}
  0x63   : > { %s1681_s14 = smov 64   ;;  %s1682_s15 = smov 4  }
  0x64   : > { %1414 = dma.hbm_to_vmem [thread:$0]  (!%p1891_p10), %s2124_s0, 1536, %s1855_s8, [#allocation3], %s1681_s14, %s1681_s14, %s1682_s15  }
  0x65   : > { %p2146_p6 = scmp.ne.s32.totalorder %s2140_s12, 0 }
  0x66   : > { %p2147_p1 = scmp.eq.s32.totalorder (!%p2146_p6), %s1825_s27, 0 }
  0x67   : > { %279 = sbr.rel (%p2146_p6) target bundleno = 391 (0x187), region = 40 }
  0x6e   : > { %1641 = dma.done.wait (%p2147_p1), [#allocation3], 1536   ;;  %p2148_p2 = pmov %p2147_p1 }
  0x6f   : > { %s285_s10 = sand.u32 1, %s1825_s27   ;;  %s1924_s25 = sand.u32 1, %s1658_s19  }
  0x70   : > { %1643 = vsyncadd (%p2148_p2), [#allocation3], 4294965760  ;;  %s1134_s28 = sshll.u32 %s1924_s25, 6  ;;  %s286_s11 = scalar_lea.sflag [#allocation6], %s285_s10 }
  0x71   : > { %s1929_s8 = scalar_lea.vmem [#allocation5], %s1134_s28  ;;  %p2149_p13 = scmp.ne.s32.totalorder %s2137_s29, 0 }
  0x73   : > { %1645 = dma.done.wait (%p2149_p13), %s286_s11, 2048  }
  0x74   : > { %1647 = vsyncadd (%p2149_p13), %s286_s11, 4294965248  ;;  %p338_p10 = scmp.lt.s32.totalorder %s1666_s21, 1  ;;  %v1683_v0 = vmov 0   ;;  %v359_v3 = vld [vmem:[%s1929_s8] sm:$0xff]  ;;  %v360_v5 = vld [vmem:[%s1929_s8 + $0x8] sm:$0xff]  ;;  %vm459_vm0 = vcmask 523264  }
  0x75   : > { %1487 = vset.pattern.permute.xlu1 %v1683_v0  ;;  %1486 = vset.pattern.permute.xlu0 %v1683_v0  ;;  %v367_v8 = vpack.c.bf16 %v360_v5, %v359_v3  ;;  %v361_v10 = vld [vmem:[%s1929_s8 + $0x10] sm:$0xff]  ;;  %v362_v11 = vld [vmem:[%s1929_s8 + $0x18] sm:$0xff]  ;;  %v363_v15 = vld [vmem:[%s1929_s8 + $0x20] sm:$0xff]  ;;  %s1952_s29 = scalar_lea.vmem [#allocation7], %s1134_s28  ;;  %s1399_s11 = smul.u32 96, %s1924_s25 }
  0x76   : > { %s339_s27 = scalar_select %p338_p10, %s1666_s21, 1  ;;  %v368_v13 = vpack.c.bf16 %v362_v11, %v361_v10  ;;  %v364_v16 = vld [vmem:[%s1929_s8 + $0x28] sm:$0xff]  ;;  %v365_v20 = vld [vmem:[%s1929_s8 + $0x30] sm:$0xff]  ;;  %v366_v21 = vld [vmem:[%s1929_s8 + $0x38] sm:$0xff] }
  0x77   : > { %1359 = vmatprep.subr.bf16.mxu1 %v367_v8  ;;  %v369_v22 = vpack.c.bf16 %v364_v16, %v363_v15  ;;  %v1488_v23 = vld [vmem:[#allocation2] sm:$0xff]   ;;  %v370_v26 = vpack.c.bf16 %v366_v21, %v365_v20  ;;  %v372_v28 = vld [vmem:[%s1952_s29 + $0x8] sm:$0xff]  ;;  %v373_v30 = vld [vmem:[%s1952_s29 + $0x10] sm:$0xff]  ;;  %s2051_s8 = scalar_lea.vmem [#allocation8], %s1399_s11  ;;  %p2150_p12 = scmp.ne.s32.totalorder %s2138_s6, 0 }
  0x78   : > { %s1223_s12 = sshll.u32 %s339_s27, 6  ;;  %1360 = vmatpush3.bf16.msra.mxu1 %v367_v8  ;;  %v1489_v24 = vld [vmem:[#allocation2 + $0x20] sm:$0xff]   ;;  %1351 = vmatprep.mubr.msk.bf16.mxu0 %vm459_vm0, %v1488_v23  ;;  %v374_v31 = vld [vmem:[%s1952_s29 + $0x18] sm:$0xff]  ;;  %v1490_v32 = vld [vmem:[#allocation2 + $0x8] sm:$0xff]   ;;  %s1400_s27 = smul.u32 1536, %s1666_s21 }
  0x79   : > { %s345_s26 = scalar_lea.vmem %s2126_s2, %s1223_s12  ;;  %1361 = vmatprep.subr.bf16.mxu1 %v368_v13  ;;  %1367 = vmatprep.mubr.msk.bf16.mxu1 %vm459_vm0, %v1489_v24  ;;  %v371_v27 = vld [vmem:[%s1952_s29] sm:$0xff]  ;;  %v1491_v33 = vld [vmem:[#allocation2 + $0x28] sm:$0xff]   ;;  %v1492_v34 = vld [vmem:[#allocation2 + $0x10] sm:$0xff]   ;;  %v380_v35 = vpack.c.bf16 %v374_v31, %v373_v30  ;;  %s984_s12 = sshll.u32 %s2051_s8, 4  ;;  %s2071_s12 = int_to_ptr.vmem [resolvable:$true] %s984_s12 }
  0x7a   : > { %v347_v1 = vld [vmem:[%s345_s26] sm:$0xff]  ;;  %v348_v2 = vld [vmem:[%s345_s26 + $0x8] sm:$0xff]  ;;  %v349_v6 = vld [vmem:[%s345_s26 + $0x10] sm:$0xff]  ;;  %v379_v29 = vpack.c.bf16 %v372_v28, %v371_v27  ;;  %s2069_s17 = scalar_lea.hbm %s2129_s5, %s1400_s27  ;;  %s1684_s14 = smov [#allocation8]  }
  0x7b   : > { %v355_v4 = vpack.c.bf16 %v348_v2, %v347_v1  ;;  %v350_v7 = vld [vmem:[%s345_s26 + $0x18] sm:$0xff]  ;;  %v351_v12 = vld [vmem:[%s345_s26 + $0x20] sm:$0xff]  ;;  %v352_v14 = vld [vmem:[%s345_s26 + $0x28] sm:$0xff]  ;;  %s1592_s15 = sshll.u32 %s1684_s14, 4  ;;  %s1593_s15 = int_to_ptr.vmem [resolvable:$false] %s1592_s15 }
  0x7c   : > { %v356_v9 = vpack.c.bf16 %v350_v7, %v349_v6  ;;  %v353_v17 = vld [vmem:[%s345_s26 + $0x30] sm:$0xff]  ;;  %v354_v18 = vld [vmem:[%s345_s26 + $0x38] sm:$0xff]  ;;  %v357_v19 = vpack.c.bf16 %v352_v14, %v351_v12  ;;  %1362 = vmatpush3.bf16.msra.mxu1 %v368_v13  ;;  %v375_v36 = vld [vmem:[%s1952_s29 + $0x20] sm:$0xff]  ;;  %s970_s26 = scalar_lea.sflag [#allocation4], %s1924_s25  ;;  %s1594_s7 = scalar_lea.vmem %s1593_s15, 3072 }
  0x7d   : > { %1343 = vmatprep.subr.bf16.mxu0 %v355_v4  ;;  %v358_v25 = vpack.c.bf16 %v354_v18, %v353_v17  ;;  %1363 = vmatprep.subr.bf16.mxu1 %v369_v22  ;;  %v376_v37 = vld [vmem:[%s1952_s29 + $0x28] sm:$0xff]  ;;  %v393_v38 = vld [vmem:[%s2125_s1 + $0x10] sm:$0xff]  ;;  %v391_v40 = vld [vmem:[%s2125_s1] sm:$0xff]  ;;  %p1595_p4 = scmp.lt.s32.totalorder %s2071_s12, %s1593_s15 }
  0x7e   : > { %1344 = vmatpush3.bf16.msra.mxu0 %v355_v4  ;;  %v1493_v39 = vld [vmem:[#allocation2 + $0x30] sm:$0xff]   ;;  %411 = vperm.xlu1 %1487, %v393_v38   ;;  %v381_v41 = vpack.c.bf16 %v376_v37, %v375_v36  ;;  %v394_v42 = vld [vmem:[%s2125_s1 + $0x18] sm:$0xff]  ;;  %v392_v47 = vld [vmem:[%s2125_s1 + $0x8] sm:$0xff] }
  0x7f   : > { %1345 = vmatprep.subr.bf16.mxu0 %v356_v9  ;;  %v377_v43 = vld [vmem:[%s1952_s29 + $0x30] sm:$0xff]  ;;  %v378_v44 = vld [vmem:[%s1952_s29 + $0x38] sm:$0xff]  ;;  %401 = vperm.xlu0 %1486, %v391_v40   ;;  %v1496_v49 = vld [vmem:[#allocation2 + $0x40] sm:$0xff]   ;;  %s1588_s29 = scalar_lea.vmem %s2071_s12, 1536 }
  0x80   : > { %1364 = vmatpush3.bf16.msra.mxu1 %v369_v22  ;;  %v1494_v45 = vld [vmem:[#allocation2 + $0x18] sm:$0xff]   ;;  %v382_v48 = vpack.c.bf16 %v378_v44, %v377_v43  ;;  %v1497_v50 = vld [vmem:[#allocation2 + $0x50] sm:$0xff]   ;;  %v396_v51 = vld [vmem:[%s2125_s1 + $0x28] sm:$0xff]  ;;  %p1589_p7 = scmp.ne.s32.totalorder %s2071_s12, %s1588_s29  ;;  %p1596_p5 = scmp.lt.s32.totalorder %s1594_s7, %s1588_s29 }
  0x81   : > { %1365 = vmatprep.subr.bf16.mxu1 %v370_v26  ;;  %v1495_v46 = vld [vmem:[#allocation2 + $0x38] sm:$0xff]   ;;  %v395_v52 = vld [vmem:[%s2125_s1 + $0x20] sm:$0xff]  ;;  %v1498_v53 = vld [vmem:[#allocation2 + $0x48] sm:$0xff]  }
  0x82   : > { %1346 = vmatpush3.bf16.msra.mxu0 %v356_v9  ;;  %416 = vperm.xlu1 %1487, %v394_v42   ;;  %v1499_v54 = vld [vmem:[#allocation2 + $0x58] sm:$0xff]   ;;  %v397_v56 = vld [vmem:[%s2125_s1 + $0x30] sm:$0xff]  ;;  %v1155_v57 = vld [vmem:[%s2125_s1 + $0x48] sm:$0xff]  ;;  %p1590_p0 = pnand %p1589_p7, %p2150_p12  ;;  %p1597_p11 = por %p1596_p5, %p1595_p4 }
  0x83   : > { %1347 = vmatprep.subr.bf16.mxu0 %v357_v19  ;;  %406 = vperm.xlu0 %1486, %v392_v47   ;;  %v398_v55 = vld [vmem:[%s2125_s1 + $0x38] sm:$0xff]  ;;  %v1154_v58 = vld [vmem:[%s2125_s1 + $0x40] sm:$0xff]  ;;  %v1156_v60 = vld [vmem:[%s2125_s1 + $0x50] sm:$0xff] }
  0x84   : > { %1366 = vmatpush3.bf16.msra.mxu1 %v370_v26  ;;  %v1157_v59 = vld [vmem:[%s2125_s1 + $0x58] sm:$0xff]  ;;  %v1159_v61 = vld [vmem:[%s2125_s1 + $0x68] sm:$0xff]  ;;  %v1158_v62 = vld [vmem:[%s2125_s1 + $0x60] sm:$0xff]  ;;  %p1591_p3 = pneg %p1590_p0 }
  0x85   : > { %1391 = vmatprep.subr.bf16.mxu1 %v379_v29  ;;  %v1161_v63 = vld [vmem:[%s2125_s1 + $0x78] sm:$0xff]  ;;  %v1160_v0 = vld [vmem:[%s2125_s1 + $0x70] sm:$0xff]  ;;  %v1187_v1 = vld [vmem:[%s2125_s1 + $0x88] sm:$0xff] }
  0x86   : > { %1348 = vmatpush3.bf16.msra.mxu0 %v357_v19  ;;  %426 = vperm.xlu1 %1487, %v396_v51   ;;  %v1186_v2 = vld [vmem:[%s2125_s1 + $0x80] sm:$0xff]  ;;  %v1189_v3 = vld [vmem:[%s2125_s1 + $0x98] sm:$0xff]  ;;  %v1188_v4 = vld [vmem:[%s2125_s1 + $0x90] sm:$0xff]  ;;  %p1598_p9 = pnand %p1597_p11, %p1591_p3 }
  0x87   : > { %1349 = vmatprep.subr.bf16.mxu0 %v358_v25  ;;  %1368 = vmatmul.mubr.msk.bf16.vlgmr.msra.gmra.mrb[0].mxu1 %vm459_vm0, %v1491_v33  ;;  %v1191_v5 = vld [vmem:[%s2125_s1 + $0xa8] sm:$0xff]  ;;  %v1190_v6 = vld [vmem:[%s2125_s1 + $0xa0] sm:$0xff]  ;;  %v1193_v7 = vld [vmem:[%s2125_s1 + $0xb8] sm:$0xff] }
  0x88   : > { %1395 = vmatpush3.bf16.msra.mxu1 %v379_v29  ;;  %1371 = vmatprep.mubr.msk.bf16.mxu1 %vm459_vm0, %v1493_v39  ;;  %v1192_v8 = vld [vmem:[%s2125_s1 + $0xb0] sm:$0xff] }
  0x89   : > { %1392 = vmatprep.subr.bf16.mxu1 %v380_v35  ;;  %421 = vperm.xlu0 %1486, %v395_v52  }
  0x8a   : > { %1350 = vmatpush3.bf16.msra.mxu0 %v358_v25  ;;  %436 = vperm.xlu1 %1487, %v398_v55  }
  0x8b   : > { %1375 = vmatprep.subr.bf16.mxu0 %v379_v29 }
  0x8c   : > { %1396 = vmatpush3.bf16.msra.mxu1 %v380_v35 }
  0x8d   : > { %1352 = vmatmul.mubr.msk.bf16.vlgmr.msra.gmra.mrb[0].mxu0 %vm459_vm0, %v1490_v32  ;;  %1393 = vmatprep.subr.bf16.mxu1 %v381_v41 }
  0x8e   : > { %1376 = vmatpush3.bf16.msra.mxu0 %v379_v29  ;;  %1355 = vmatprep.mubr.msk.bf16.mxu0 %vm459_vm0, %v1492_v34 }
  0x8f   : > { %1377 = vmatprep.subr.bf16.mxu0 %v380_v35  ;;  %1372 = vmatmul.mubr.msk.bf16.gmra.mrb[4].mxu1 %vm459_vm0, %v1495_v46 }
  0x90   : > { %1397 = vmatpush3.bf16.msra.mxu1 %v381_v41  ;;  %1387 = vmatprep.mubr.msk.bf16.mxu1 %vm459_vm0, %v1497_v50 }
  0x91   : > { %1394 = vmatprep.subr.bf16.mxu1 %v382_v48  ;;  %431 = vperm.xlu0 %1486, %v397_v56  }
  0x92   : > { %1378 = vmatpush3.bf16.msra.mxu0 %v380_v35  ;;  %602 = vperm.xlu1 %1487, %v1155_v57  }
  0x93   : > { %1379 = vmatprep.subr.bf16.mxu0 %v381_v41 }
  0x94   : > { %1398 = vmatpush3.bf16.msra.mxu1 %v382_v48 }
  0x95   : > { %1356 = vmatmul.mubr.msk.bf16.gmra.mrb[4].mxu0 %vm459_vm0, %v1494_v45  ;;  %597 = vperm.xlu0 %1486, %v1154_v58  }
  0x96   : > { %1380 = vmatpush3.bf16.msra.mxu0 %v381_v41  ;;  %1383 = vmatprep.mubr.msk.bf16.mxu0 %vm459_vm0, %v1496_v49 }
  0x97   : > { %1381 = vmatprep.subr.bf16.mxu0 %v382_v48  ;;  %1388 = vmatmul.mubr.msk.bf16.vlgmr.msra.gmra.mrb[8].mxu1 %vm459_vm0, %v1499_v54 }
  0x98   : > { %612 = vperm.xlu1 %1487, %v1157_v59  }
  0x99   : > { %607 = vperm.xlu0 %1486, %v1156_v60  }
  0x9a   : > { %1382 = vmatpush3.bf16.msra.mxu0 %v382_v48 }
  0x9c   : > { %622 = vperm.xlu1 %1487, %v1159_v61  }
  0x9d   : > { %1384 = vmatmul.mubr.msk.bf16.vlgmr.msra.gmra.mrb[8].mxu0 %vm459_vm0, %v1498_v53  ;;  %617 = vperm.xlu0 %1486, %v1158_v62  }
  0xa0   : > { %632 = vperm.xlu1 %1487, %v1161_v63  }
  0xa1   : > { %627 = vperm.xlu0 %1486, %v1160_v0  }
  0xa4   : > { %798 = vperm.xlu1 %1487, %v1187_v1  }
  0xa5   : > { %793 = vperm.xlu0 %1486, %v1186_v2  }
  0xa8   : > { %808 = vperm.xlu1 %1487, %v1189_v3  }
  0xa9   : > { %803 = vperm.xlu0 %1486, %v1188_v4  }
  0xac   : > { %818 = vperm.xlu1 %1487, %v1191_v5  }
  0xad   : > { %813 = vperm.xlu0 %1486, %v1190_v6  }
  0xb0   : > { %828 = vperm.xlu1 %1487, %v1193_v7  }
  0xb1   : > { %823 = vperm.xlu0 %1486, %v1192_v8  }
  0xfd   : > { %v412_v9 = vpop.permute.xlu1 %411 }
  0xfe   : > { %v402_v10 = vpop.permute.xlu0 %401 }
 0x101   : > { %v417_v11 = vpop.permute.xlu1 %416 }
 0x102   : > { %v407_v12 = vpop.permute.xlu0 %406 }
 0x105   : > { %v427_v13 = vpop.permute.xlu1 %426 }
 0x108   : > { %v422_v14 = vpop.permute.xlu0 %421 }
 0x109   : > { %v437_v15 = vpop.permute.xlu1 %436 }
 0x110   : > { %v432_v16 = vpop.permute.xlu0 %431 }
 0x111   : > { %v603_v17 = vpop.permute.xlu1 %602 }
 0x114   : > { %v598_v18 = vpop.permute.xlu0 %597 }
 0x117   : > { %v613_v19 = vpop.permute.xlu1 %612 }
 0x118   : > { %v608_v20 = vpop.permute.xlu0 %607 }
 0x11b   : > { %v623_v21 = vpop.permute.xlu1 %622 }
 0x11c   : > { %v618_v22 = vpop.permute.xlu0 %617 }
 0x11f   : > { %v633_v23 = vpop.permute.xlu1 %632 }
 0x120   : > { %v628_v24 = vpop.permute.xlu0 %627 }
 0x123   : > { %v2044_v25 = vpop.permute.xlu1 %798 }
 0x124   : > { %v2046_v26 = vpop.permute.xlu0 %793 }
 0x127   : > { %v2048_v27 = vpop.permute.xlu1 %808 }
 0x128   : > { %v804_v28 = vpop.permute.xlu0 %803 }
 0x12b   : > { %v819_v48 = vpop.permute.xlu1 %818 }
 0x12c   : > { %v814_v50 = vpop.permute.xlu0 %813 }
 0x12f   : > { %v829_v6 = vpop.permute.xlu1 %828 }
 0x130   : > { %v824_v8 = vpop.permute.xlu0 %823 }
 0x15a   : > { %v1369_v30 = vpop.f32.mrb[0].mxu1 }
 0x15b   : > { %v701_v32 = vpop.f32.mrb[1].mxu1  ;;  %v710_v38 = vadd.f32 %v1369_v30, %v608_v20 }
 0x15c   : > { %v1370_v36 = vpop.f32.mrb[2].mxu1  ;;  %v702_v43 = vadd.f32 %v701_v32, %v598_v18 }
 0x15d   : > { %v713_v40 = vadd.f32 %v1370_v36, %v613_v19  ;;  %v704_v42 = vpop.f32.mrb[3].mxu1 }
 0x15e   : > { %v705_v45 = vadd.f32 %v704_v42, %v603_v17 }
 0x15f   : > { %v1276_v46 = vpack.c.bf16 %v713_v40, %v710_v38 }
 0x160   : > { %v1353_v29 = vpop.f32.mrb[0].mxu0  ;;  %v1271_v49 = vpack.c.bf16 %v705_v45, %v702_v43 }
 0x161   : > { %v506_v31 = vpop.f32.mrb[1].mxu0  ;;  %v515_v34 = vadd.f32 %v1353_v29, %v412_v9  ;;  %1312 = vst [vmem:[%s2051_s8 + $0x28] sm:$0xff] %v1276_v46  }
 0x162   : > { %v1354_v33 = vpop.f32.mrb[2].mxu0  ;;  %v507_v39 = vadd.f32 %v506_v31, %v402_v10  ;;  %1311 = vst [vmem:[%s2051_s8 + $0x20] sm:$0xff] %v1271_v49   ;;  %v1373_v52 = vpop.f32.mrb[4].mxu1 }
 0x163   : > { %v518_v35 = vadd.f32 %v1354_v33, %v417_v11  ;;  %v509_v37 = vpop.f32.mrb[3].mxu0  ;;  %v717_v54 = vpop.f32.mrb[5].mxu1  ;;  %v726_v60 = vadd.f32 %v1373_v52, %v628_v24 }
 0x164   : > { %v510_v41 = vadd.f32 %v509_v37, %v407_v12  ;;  %v1374_v58 = vpop.f32.mrb[6].mxu1  ;;  %v718_v1 = vadd.f32 %v717_v54, %v618_v22 }
 0x165   : > { %v1256_v44 = vpack.c.bf16 %v518_v35, %v515_v34  ;;  %v729_v62 = vadd.f32 %v1374_v58, %v633_v23  ;;  %v720_v0 = vpop.f32.mrb[7].mxu1 }
 0x166   : > { %v1251_v47 = vpack.c.bf16 %v510_v41, %v507_v39  ;;  %v721_v3 = vadd.f32 %v720_v0, %v623_v21 }
 0x167   : > { %1308 = vst [vmem:[%s2051_s8 + $0x8] sm:$0xff] %v1256_v44   ;;  %v1286_v4 = vpack.c.bf16 %v729_v62, %v726_v60 }
 0x168   : > { %1252 = vst [vmem:[%s2051_s8] sm:$0xff] %v1251_v47   ;;  %v1357_v51 = vpop.f32.mrb[4].mxu0  ;;  %v1281_v7 = vpack.c.bf16 %v721_v3, %v718_v1 }
 0x169   : > { %v522_v53 = vpop.f32.mrb[5].mxu0  ;;  %v531_v56 = vadd.f32 %v1357_v51, %v432_v16  ;;  %1314 = vst [vmem:[%s2051_s8 + $0x38] sm:$0xff] %v1286_v4  }
 0x16a   : > { %v1358_v55 = vpop.f32.mrb[6].mxu0  ;;  %v523_v61 = vadd.f32 %v522_v53, %v422_v14  ;;  %1313 = vst [vmem:[%s2051_s8 + $0x30] sm:$0xff] %v1281_v7   ;;  %v1389_v10 = vpop.f32.mrb[8].mxu1 }
 0x16b   : > { %v534_v57 = vadd.f32 %v1358_v55, %v437_v15  ;;  %v525_v59 = vpop.f32.mrb[7].mxu0  ;;  %v913_v12 = vpop.f32.mrb[9].mxu1  ;;  %v922_v18 = vadd.f32 %v1389_v10, %v824_v8 }
 0x16c   : > { %v526_v63 = vadd.f32 %v525_v59, %v427_v13  ;;  %v1390_v16 = vpop.f32.mrb[10].mxu1  ;;  %v914_v23 = vadd.f32 %v913_v12, %v814_v50 }
 0x16d   : > { %v1266_v2 = vpack.c.bf16 %v534_v57, %v531_v56  ;;  %v925_v20 = vadd.f32 %v1390_v16, %v829_v6  ;;  %v916_v22 = vpop.f32.mrb[11].mxu1 }
 0x16e   : > { %v1261_v5 = vpack.c.bf16 %v526_v63, %v523_v61 }
 0x16f   : > { %1310 = vst [vmem:[%s2051_s8 + $0x18] sm:$0xff] %v1266_v2  }
 0x170   : > { %1309 = vst [vmem:[%s2051_s8 + $0x10] sm:$0xff] %v1261_v5   ;;  %v1385_v9 = vpop.f32.mrb[8].mxu0 }
 0x171   : > { %v897_v11 = vpop.f32.mrb[9].mxu0  ;;  %v906_v14 = vadd.f32 %v1385_v9, %v804_v28  ;;  %v917_v28 = vadd.f32 %v916_v22, %v819_v48 }
 0x172   : > { %v1386_v13 = vpop.f32.mrb[10].mxu0  ;;  %v898_v19 = vadd.f32 %v897_v11, %v2046_v26 }
 0x173   : > { %v909_v15 = vadd.f32 %v1386_v13, %v2048_v27  ;;  %v900_v17 = vpop.f32.mrb[11].mxu0  ;;  %v1306_v27 = vpack.c.bf16 %v925_v20, %v922_v18  ;;  %v1301_v26 = vpack.c.bf16 %v917_v28, %v914_v23 }
 0x174   : > { %v901_v21 = vadd.f32 %v900_v17, %v2044_v25 }
 0x175   : > { %v1296_v24 = vpack.c.bf16 %v909_v15, %v906_v14  ;;  %1318 = vst [vmem:[%s2051_s8 + $0x58] sm:$0xff] %v1306_v27   ;;  %1317 = vst [vmem:[%s2051_s8 + $0x50] sm:$0xff] %v1301_v26  }
 0x176   : > { %v1291_v29 = vpack.c.bf16 %v901_v21, %v898_v19 }
 0x177   : > { %1316 = vst [vmem:[%s2051_s8 + $0x48] sm:$0xff] %v1296_v24  }
 0x178   : > { %1315 = vst [vmem:[%s2051_s8 + $0x40] sm:$0xff] %v1291_v29  }
 0x179   : > { %1601 = shalt.err (!%p1598_p9)
}
 0x17a   : > { %s1602_s16 = scalar_lea.hbm %s2069_s17, 1536  ;;  %s1606_s11 = scalar_lea.hbm %s2129_s5, 3072 }
 0x17b   : > { %p1603_p8 = scmp.ne.s32.totalorder %s2069_s17, %s1602_s16  ;;  %p1607_p2 = scmp.lt.u32.totalorder %s2069_s17, %s2129_s5 }
 0x17c   : > { %p1608_p13 = scmp.lt.u32.totalorder %s1606_s11, %s1602_s16  ;;  %p1610_p7 = scmp.lt.u32.totalorder %s1602_s16, %s2069_s17 }
 0x17d   : > { %p1604_p6 = pnand %p1603_p8, %p2150_p12 }
 0x17e   : > { %p1609_p10 = por %p1608_p13, %p1607_p2 }
 0x17f   : > { %p1605_p1 = pneg %p1604_p6 }
 0x180   : > { %p1611_p0 = por %p1610_p7, %p1609_p10 }
 0x182   : > { %p1612_p3 = pnand %p1611_p0, %p1605_p1 }
 0x184   : > { %1615 = shalt.err (!%p1612_p3)
}
 0x185   : > { %s1685_s21 = smov 64   ;;  %s1686_s13 = smov 4  }
 0x186   : > { %1409 = dma.vmem_to_hbm [thread:$0]  (%p2150_p12), %s2071_s12, 1536, %s2069_s17, %s970_s26, %s1685_s21, %s1685_s21, %s1686_s13  }
 0x187 PF: > { %s999_s29 = sand.u32 1, %s1654_s18   ;;  %p2151_p4 = scmp.ne.s32.totalorder %s2139_s9, 0 }
 0x188   : > { %p2152_p5 = scmp.ge.s32.totalorder %s1674_s23, 2  ;;  %s1000_s14 = scalar_lea.sflag [#allocation4], %s999_s29 }
 0x18a   : > { %p1423_p11 = pnand %p2152_p5, %p2151_p4 }
 0x18c   : > { %1649 = dma.done.wait (!%p1423_p11), %s1000_s14, 1536  }
 0x18d   : > { %1651 = vsyncadd (!%p1423_p11), %s1000_s14, 4294965760  ;;  %s22_s23 = sadd.s32 1, %s1674_s23   ;;  %s2153_s18 = smov %s1658_s19 }
 0x18e   : > { %p19_p9 = scmp.ge.s32.totalorder %s22_s23, 4   ;;  %s2154_s19 = smov %s1662_s20 }
 0x18f   : > { %s2155_s20 = smov %s1765_s30  ;;  %s2156_s21 = smov %s1670_s22 }
 0x190   : > { %s2157_s22 = smov %s2159_s24  ;;  %21 = sbr.rel (!%p19_p9) target bundleno = 7 (0x7), region = 110 }
 0x197   :  { %1005 = vsyncpa [#allocation3], 1 }
 0x198   :  { %1007 = vsyncpa [#allocation3 + $0x1], 1 }
 0x199   :  { %1008 = vsyncpa [#allocation6], 1 }
 0x19a   :  { %1010 = vsyncpa [#allocation6 + $0x1], 1 }
 0x19b   :  { %1011 = vsyncpa [#allocation4], 1 }
 0x19c   :  { %1013 = vsyncpa [#allocation4 + $0x1], 1 }

</bundles_post_ra>
